<compile_context>
chip_gen: v6e
topology: v6e:2x2x1
jax: 0.10.0
libtpu: 0.0.40
codegen_flags: <defaults>
</compile_context>

<pallas_src>
import jax
import jax.numpy as jnp
from jax import lax
from jax.experimental import pallas as pl
from jax.experimental.pallas import tpu as pltpu


def _round_up(x, m):
    return ((x + m - 1) // m) * m


def encode_attn_kernel(x_ref, w_ref, b_ref, o_ref):
    # x_ref: (TM, D) row tile (input dtype)
    # w_ref: (D, D)  weight in torch (out_features, in_features) layout, bf16
    # b_ref: (1, D)  bias, f32
    x = x_ref[...]

    # bf16 operands -> MXU, f32 accumulation. Contract x's dim 1 with W's
    # in_features dim (dim 1) so no transposed weight copy is ever materialized.
    y = lax.dot_general(
        x.astype(jnp.bfloat16),
        w_ref[...],
        dimension_numbers=(((1,), (1,)), ((), ())),
        preferred_element_type=jnp.float32,
    )

    # residual + bias in f32
    l_out = x.astype(jnp.float32) + y + b_ref[...]

    # TODO(synk): F.dropout is identity on the eval path; a training-mode kernel
    # would draw a keep-mask via pltpu.prng_random_bits and rescale by 1/(1-p).

    d = l_out.shape[-1]
    # Two independent cross-lane reductions over l_out (can issue concurrently on
    # the XLU) instead of serializing sum -> subtract -> sum-of-squares.
    s = jnp.sum(l_out, axis=-1, keepdims=True)
    s2 = jnp.sum(l_out * l_out, axis=-1, keepdims=True)
    mean = s * (1.0 / d)
    # torch.std default is unbiased (Bessel correction): var = (sum x^2 - D*mean^2)/(D-1)
    var = (s2 - d * (mean * mean)) * (1.0 / (d - 1))
    var = jnp.maximum(var, 0.0)  # guard tiny negative from cancellation
    std = jnp.sqrt(var)

    inv = pl.reciprocal(std + 1e-9, approx=True)  # EUP slot, frees VALU
    o_ref[...] = ((l_out - mean) * inv).astype(o_ref.dtype)


def encode_attn_forward(merge, weight, bias, *, row_tile=256):
    """merge: (B, S, D); weight: (D, D) in torch (out, in) layout; bias: (D,)."""
    B, S, D = merge.shape
    rows = B * S
    x2d = merge.reshape(rows, D)

    # Adaptive row tile: large (default 256, a multiple of 128 and 256) for real
    # workloads; shrink (multiple of 8) for tiny inputs so we don't over-pad.
    tm = min(row_tile, _round_up(rows, 8))
    tm = max(8, (tm // 8) * 8)
    padded_rows = _round_up(rows, tm)
    if padded_rows != rows:
        # Pad with zeros; padded rows normalize harmlessly and are sliced off below.
        x2d = jnp.pad(x2d, ((0, padded_rows - rows), (0, 0)))

    # Weight resident in VMEM in bf16 (halves its footprint); bias in f32.
    w_bf16 = weight.astype(jnp.bfloat16)
    b2d = bias.astype(jnp.float32).reshape(1, D)

    grid = (padded_rows // tm,)

    # Explicit VMEM budget: double-buffered x/out tiles + double-buffered resident
    # weight/bias + room for the f32 in-kernel temporaries. Capped so it stays
    # sane on v7x (64 MiB physical VMEM per TensorCore).
    in_itemsize = jnp.dtype(merge.dtype).itemsize
    x_tile_bytes = tm * D * in_itemsize
    out_tile_bytes = tm * D * in_itemsize
    w_bytes = D * D * 2
    b_bytes = D * 4
    est = 2 * (x_tile_bytes + out_tile_bytes) + 2 * (w_bytes + b_bytes) + 4 * tm * D * 4
    vmem_limit = int(min(max(est + (2 << 20), 32 << 20), 96 << 20))

    out2d = pl.pallas_call(
        encode_attn_kernel,
        out_shape=jax.ShapeDtypeStruct((padded_rows, D), merge.dtype),
        grid_spec=pltpu.PrefetchScalarGridSpec(
            num_scalar_prefetch=0,
            grid=grid,
            in_specs=[
                pl.BlockSpec((tm, D), lambda i: (i, 0)),   # x row tile
                pl.BlockSpec((D, D), lambda i: (0, 0)),    # weight (resident)
                pl.BlockSpec((1, D), lambda i: (0, 0)),    # bias   (resident)
            ],
            out_specs=pl.BlockSpec((tm, D), lambda i: (i, 0)),
        ),
        compiler_params=pltpu.CompilerParams(
            dimension_semantics=("parallel",),   # shards grid steps across TCs on v7x
            vmem_limit_bytes=vmem_limit,
        ),
    )(x2d, w_bf16, b2d)

    return out2d[:rows].reshape(B, S, D)


def _xavier_uniform(key, fan_out, fan_in, dtype=jnp.float32):
    limit = (6.0 / (fan_in + fan_out)) ** 0.5
    return jax.random.uniform(key, (fan_out, fan_in), dtype=dtype,
                              minval=-limit, maxval=limit)


if __name__ == "__main__":
    d_model = 128   # small, lane-aligned stand-in for the default 512
    B, S = 2, 8

    key = jax.random.PRNGKey(0)
    k_x, k_w, k_b = jax.random.split(key, 3)

    merge = jax.random.normal(k_x, (B, S, d_model), dtype=jnp.float32)
    # nn.Linear weight is (out_features, in_features); reset_parameters uses xavier_uniform_
    weight = _xavier_uniform(k_w, d_model, d_model)
    # bias keeps nn.Linear's default uniform(-1/sqrt(fan_in), 1/sqrt(fan_in)) init
    bound = 1.0 / (d_model ** 0.5)
    bias = jax.random.uniform(k_b, (d_model,), dtype=jnp.float32,
                              minval=-bound, maxval=bound)

    out = encode_attn_forward(merge, weight, bias)
    jax.block_until_ready(out)

    # Reference in plain JAX using the same bf16-operand / f32-accumulate matmul
    # (the kernel additionally uses an approximate reciprocal, hence the tolerance).
    y_ref = jnp.einsum("bsd,ed->bse",
                       merge.astype(jnp.bfloat16), weight.astype(jnp.bfloat16),
                       preferred_element_type=jnp.float32)
    l_ref = merge + y_ref + bias
    mean_ref = l_ref.mean(-1, keepdims=True)
    std_ref = jnp.sqrt(((l_ref - mean_ref) ** 2).sum(-1, keepdims=True) / (d_model - 1))
    ref = (l_ref - mean_ref) / (std_ref + 1e-9)
    assert jnp.allclose(out, ref, atol=3e-2, rtol=3e-2), "mismatch vs reference"

    print("KERNEL_OK")
</pallas_src>

<mosaic_0001>
module attributes {stable_mosaic.version = 11 : i64} {
  func.func @encode_attn_kernel(%arg0: i32, %arg1: memref<16x128xf32, #tpu.memory_space<vmem>>, %arg2: memref<128x128xbf16, #tpu.memory_space<vmem>>, %arg3: memref<1x128xf32, #tpu.memory_space<vmem>>, %arg4: memref<16x128xf32, #tpu.memory_space<vmem>>) attributes {dimension_semantics = [#tpu.dimension_semantics<parallel>], iteration_bounds = array<i64: 1>, scalar_prefetch = 0 : i64, scratch_operands = 0 : i64, tpu.core_type = #tpu.core_type<tc>, window_params = [{transform_indices = @transform_0, window_bounds = array<i64: 16, 128>}, {pipeline_mode = #tpu.pipeline_mode<synchronous>, transform_indices = @transform_1, window_bounds = array<i64: 128, 128>}, {pipeline_mode = #tpu.pipeline_mode<synchronous>, transform_indices = @transform_2, window_bounds = array<i64: 1, 128>}, {transform_indices = @transform_3, window_bounds = array<i64: 16, 128>}]} {
    %c0 = arith.constant 0 : index
    %c0_0 = arith.constant 0 : index
    %0 = vector.load %arg1[%c0, %c0_0] : memref<16x128xf32, #tpu.memory_space<vmem>>, vector<16x128xf32>
    %1 = arith.truncf %0 : vector<16x128xf32> to vector<16x128xbf16>
    %c0_1 = arith.constant 0 : index
    %c0_2 = arith.constant 0 : index
    %2 = vector.load %arg2[%c0_1, %c0_2] : memref<128x128xbf16, #tpu.memory_space<vmem>>, vector<128x128xbf16>
    %cst = arith.constant dense<0.000000e+00> : vector<16x128xf32>
    %3 = tpu.matmul %1, %2, %cst {dimension_numbers = #tpu.dot_dimension_numbers<[1], [1], [0], [0], [0, 0, 1, 0], [], []>} : vector<16x128xbf16>, vector<128x128xbf16>, vector<16x128xf32> -> vector<16x128xf32>
    %4 = arith.addf %0, %3 : vector<16x128xf32>
    %c0_3 = arith.constant 0 : index
    %c0_4 = arith.constant 0 : index
    %5 = vector.load %arg3[%c0_3, %c0_4] : memref<1x128xf32, #tpu.memory_space<vmem>>, vector<1x128xf32>
    %6 = vector.broadcast %5 : vector<1x128xf32> to vector<16x128xf32>
    %7 = arith.addf %4, %6 : vector<16x128xf32>
    %cst_5 = arith.constant dense<0.000000e+00> : vector<16xf32>
    %8 = vector.multi_reduction <add>, %7, %cst_5 [1] : vector<16x128xf32> to vector<16xf32>
    %9 = vector.shape_cast %8 : vector<16xf32> to vector<16x1xf32>
    %10 = arith.mulf %7, %7 : vector<16x128xf32>
    %cst_6 = arith.constant dense<0.000000e+00> : vector<16xf32>
    %11 = vector.multi_reduction <add>, %10, %cst_6 [1] : vector<16x128xf32> to vector<16xf32>
    %12 = vector.shape_cast %11 : vector<16xf32> to vector<16x1xf32>
    %cst_7 = arith.constant 7.812500e-03 : f32
    %13 = vector.broadcast %cst_7 : f32 to vector<16x1xf32>
    %14 = arith.mulf %9, %13 : vector<16x1xf32>
    %15 = arith.mulf %14, %14 : vector<16x1xf32>
    %cst_8 = arith.constant 1.280000e+02 : f32
    %16 = vector.broadcast %cst_8 : f32 to vector<16x1xf32>
    %17 = arith.mulf %16, %15 : vector<16x1xf32>
    %18 = arith.subf %12, %17 : vector<16x1xf32>
    %cst_9 = arith.constant 0.00787401571 : f32
    %19 = vector.broadcast %cst_9 : f32 to vector<16x1xf32>
    %20 = arith.mulf %18, %19 : vector<16x1xf32>
    %cst_10 = arith.constant 0.000000e+00 : f32
    %21 = vector.broadcast %cst_10 : f32 to vector<16x1xf32>
    %22 = arith.maximumf %20, %21 : vector<16x1xf32>
    %23 = math.sqrt %22 : vector<16x1xf32>
    %cst_11 = arith.constant 9.99999971E-10 : f32
    %24 = vector.broadcast %cst_11 : f32 to vector<16x1xf32>
    %25 = arith.addf %23, %24 : vector<16x1xf32>
    %26 = tpu.reciprocal %25 {approx = true} : vector<16x1xf32> -> vector<16x1xf32>
    %27 = vector.broadcast %14 : vector<16x1xf32> to vector<16x128xf32>
    %28 = arith.subf %7, %27 : vector<16x128xf32>
    %29 = vector.broadcast %26 : vector<16x1xf32> to vector<16x128xf32>
    %30 = arith.mulf %28, %29 : vector<16x128xf32>
    %c0_12 = arith.constant 0 : index
    %c0_13 = arith.constant 0 : index
    %31 = vector.load %arg4[%c0_12, %c0_13] : memref<16x128xf32, #tpu.memory_space<vmem>>, vector<16x128xf32>
    tpu.vector_store %arg4[%c0_12, %c0_13], %30 {strides = array<i32>} : memref<16x128xf32, #tpu.memory_space<vmem>>, vector<16x128xf32>,
    return
  }
  func.func @transform_0(%arg0: i32) -> (i32, i32) {
    %c0_i32 = arith.constant 0 : i32
    %c0_i32_0 = arith.constant 0 : i32
    return %arg0, %c0_i32 : i32, i32
  }
  func.func @transform_1(%arg0: i32) -> (i32, i32) {
    %c0_i32 = arith.constant 0 : i32
    %c0_i32_0 = arith.constant 0 : i32
    %c0_i32_1 = arith.constant 0 : i32
    return %c0_i32, %c0_i32_0 : i32, i32
  }
  func.func @transform_2(%arg0: i32) -> (i32, i32) {
    %c0_i32 = arith.constant 0 : i32
    %c0_i32_0 = arith.constant 0 : i32
    %c0_i32_1 = arith.constant 0 : i32
    return %c0_i32, %c0_i32_0 : i32, i32
  }
  func.func @transform_3(%arg0: i32) -> (i32, i32) {
    %c0_i32 = arith.constant 0 : i32
    %c0_i32_0 = arith.constant 0 : i32
    return %arg0, %c0_i32 : i32, i32
  }
}

</mosaic_0001>

<bundles_post_ra>
// kernel: tpu_custom_call.1
= control target key start
LH: loop header
LB: loop body
LE: loop exit
PB: predicated region body
PF: predicated region fallthrough
CT: control target
= control target key end

     0   :  { %8 = vsyncpa [#allocation3], 0  ;;  %s403_s0 = inlined_call_operand.hbm [shape: f32[16,128], index: 0, kind: input, shape index: {}]   ;;  %s404_s1 = inlined_call_operand.hbm [shape: bf16[128,128], index: 1, kind: input, shape index: {}]   ;;  %s405_s2 = inlined_call_operand.vmem [shape: f32[1,128], index: 2, kind: input, shape index: {}]   ;;  %s406_s3 = inlined_call_operand.hbm [shape: f32[16,128], index: 3, kind: output, shape index: {}]  }
   0x1   :  { %9 = vsyncpa [#allocation6], 0 }
   0x2   :  { %10 = vsyncpa [#allocation4], 0  ;;  %s356_s12 = smov [#allocation2]  }
   0x3   :  { %s16_s13 = sshll.u32 %s356_s12, 4  ;;  %s17_s13 = int_to_ptr.vmem [resolvable:$true] %s16_s13 }
   0x4   :  { %s298_s14 = scalar_lea.vmem %s17_s13, 256  ;;  %p303_p1 = scmp.lt.s32.totalorder %s17_s13, %s17_s13 }
   0x5   :  { %p299_p0 = scmp.ne.s32.totalorder %s17_s13, %s298_s14  ;;  %p304_p2 = scmp.lt.s32.totalorder %s298_s14, %s298_s14 }
   0x7   :  { %p305_p3 = por %p304_p2, %p303_p1 }
   0x9   :  { %p306_p4 = pnand %p305_p3, %p299_p0 }
   0xb   :  { %309 = shalt.err (!%p306_p4)
}
   0xc   :  { %s357_s15 = smov 128   ;;  %s358_s16 = smov 8  }
   0xd   :  { %22 = dma.hbm_to_vmem [thread:$0]  %s403_s0, 256, %s17_s13, [#allocation3], %s357_s15, %s357_s15, %s358_s16  }
   0xe   :  { %s359_s19 = smov [#allocation5]  }
   0xf   :  { %s28_s20 = sshll.u32 %s359_s19, 4  ;;  %s29_s20 = int_to_ptr.vmem [resolvable:$true] %s28_s20 }
  0x10   :  { %s318_s21 = scalar_lea.vmem %s29_s20, 1024  ;;  %p323_p6 = scmp.lt.s32.totalorder %s29_s20, %s29_s20 }
  0x11   :  { %p319_p5 = scmp.ne.s32.totalorder %s29_s20, %s318_s21  ;;  %p324_p7 = scmp.lt.s32.totalorder %s318_s21, %s318_s21 }
  0x13   :  { %p325_p8 = por %p324_p7, %p323_p6 }
  0x15   :  { %p326_p9 = pnand %p325_p8, %p319_p5 }
  0x17   :  { %329 = shalt.err (!%p326_p9)
}
  0x18   :  { %s360_s22 = smov 64   ;;  %s361_s23 = smov 4  }
  0x19   :  { %34 = dma.hbm_to_vmem [thread:$0]  %s404_s1, 1024, %s29_s20, [#allocation6], %s360_s22, %s360_s22, %s361_s23  }
  0x1a   :  { %350 = dma.done.wait [#allocation3], 256  }
  0x1b   :  { %351 = vsyncadd [#allocation3], 4294967040 }
  0x1c   :  { %352 = dma.done.wait [#allocation6], 1024  }
  0x1d   :  { %353 = vsyncadd [#allocation6], 4294966272  ;;  %v362_v0 = vmov 0.0   ;;  %vm363_vm0 = vmmov 0   ;;  %v274_v1 = vld [vmem:[#allocation5 + $0x38] sm:$0xff]   ;;  %v275_v2 = vld [vmem:[#allocation5 + $0x30] sm:$0xff]  }
  0x1e   :  { %245 = vmatprep.subr.bf16.mxu0 %v362_v0  ;;  %261 = vmatprep.mubr.msk.bf16.mxu0 %vm363_vm0, %v362_v0  ;;  %v276_v3 = vld [vmem:[#allocation5 + $0x28] sm:$0xff]   ;;  %v277_v4 = vld [vmem:[#allocation5 + $0x20] sm:$0xff]   ;;  %v278_v5 = vld [vmem:[#allocation5 + $0x18] sm:$0xff]  }
  0x1f   :  { %246 = vmatpush3.bf16.xpose.msra.mxu0 %v274_v1  ;;  %v279_v6 = vld [vmem:[#allocation5 + $0x10] sm:$0xff]   ;;  %v280_v7 = vld [vmem:[#allocation5 + $0x8] sm:$0xff]   ;;  %v281_v8 = vld [vmem:[#allocation5] sm:$0xff]  }
  0x20   :  { %247 = vmatprep.subr.bf16.mxu0 %v362_v0  ;;  %v44_v9 = vld [vmem:[#allocation2] sm:$0xff]  ;;  %v45_v10 = vld [vmem:[#allocation2 + $0x8] sm:$0xff] }
  0x21   :  { %v46_v11 = vpack.c.bf16 %v45_v10, %v44_v9  ;;  %v235_v13 = vld [vmem:[%s405_s2] ss:$0 sm:$0xff]  ;;  %s364_s2 = smov [#allocation7]  }
  0x22   :  { %s214_s26 = sshll.u32 %s364_s2, 4  ;;  %s215_s26 = int_to_ptr.vmem [resolvable:$true] %s214_s26 }
  0x23   :  { %s330_s27 = scalar_lea.vmem %s215_s26, 256  ;;  %p335_p11 = scmp.lt.s32.totalorder %s215_s26, %s215_s26 }
  0x24   :  { %p331_p10 = scmp.ne.s32.totalorder %s215_s26, %s330_s27  ;;  %p336_p12 = scmp.lt.s32.totalorder %s330_s27, %s330_s27 }
  0x26   :  { %p337_p13 = por %p336_p12, %p335_p11 }
  0x27   :  { %248 = vmatpush3.bf16.xpose.msra.mxu0 %v275_v2 }
  0x28   :  { %249 = vmatprep.subr.bf16.mxu0 %v362_v0  ;;  %p338_p0 = pnand %p337_p13, %p331_p10 }
  0x2f   :  { %250 = vmatpush3.bf16.xpose.msra.mxu0 %v276_v3 }
  0x30   :  { %251 = vmatprep.subr.bf16.mxu0 %v362_v0 }
  0x37   :  { %252 = vmatpush3.bf16.xpose.msra.mxu0 %v277_v4 }
  0x38   :  { %253 = vmatprep.subr.bf16.mxu0 %v362_v0 }
  0x3f   :  { %254 = vmatpush3.bf16.xpose.msra.mxu0 %v278_v5 }
  0x40   :  { %255 = vmatprep.subr.bf16.mxu0 %v362_v0 }
  0x47   :  { %256 = vmatpush3.bf16.xpose.msra.mxu0 %v279_v6 }
  0x48   :  { %257 = vmatprep.subr.bf16.mxu0 %v362_v0 }
  0x4f   :  { %258 = vmatpush3.bf16.xpose.msra.mxu0 %v280_v7 }
  0x50   :  { %259 = vmatprep.subr.bf16.mxu0 %v362_v0 }
  0x57   :  { %260 = vmatpush3.bf16.xpose.msra.mxu0 %v281_v8 }
  0x5e   :  { %262 = vmatmul.mubr.bf16.vlgmr.msra.gmra.mxu0 %v46_v11 }
 0x11e   :  { %v145_v12 = vpop.f32.mrf.mxu0 }
 0x11f   :  { %v152_v14 = vadd.f32 %v145_v12, %v44_v9 }
 0x120   :  { %v263_v15 = vpop.f32.mrf.mxu0 }
 0x121   :  { %v161_v16 = vadd.f32 %v235_v13, %v152_v14 }
 0x122   :  { %v148_v17 = vpop.f32.mrf.mxu0 }
 0x123   :  { %v153_v18 = vadd.f32 %v148_v17, %v45_v10  ;;  %163 = vadd.xlane.f32.xlu0 %v161_v16  ;;  %v167_v19 = vmul.f32 %v161_v16, %v161_v16 }
 0x124   :  { %v264_v20 = vpop.f32.mrf.mxu0 }
 0x125   :  { %v162_v21 = vadd.f32 %v235_v13, %v153_v18  ;;  %169 = vadd.xlane.f32.xlu1 %v167_v19 }
 0x127   :  { %165 = vadd.xlane.f32.xlu0 %v162_v21  ;;  %v168_v22 = vmul.f32 %v162_v21, %v162_v21 }
 0x129   :  { %171 = vadd.xlane.f32.xlu1 %v168_v22 }
 0x1ac   :  { %v164_v23 = vpop.xlane.xlu0 %163 }
 0x1ad   :  { %v173_v24 = vmul.f32 0.0078125, %v164_v23 }
 0x1ae   :  { %v170_v26 = vpop.xlane.xlu1 %169 }
 0x1af   :  { %v175_v25 = vmul.f32 %v173_v24, %v173_v24  ;;  %v203_v51 = vsub.f32 %v161_v16, %v173_v24 }
 0x1b0   :  { %v166_v27 = vpop.xlane.xlu0 %165 }
 0x1b1   :  { %v177_v28 = vmul.f32 128.0, %v175_v25  ;;  %v174_v29 = vmul.f32 0.0078125, %v166_v27 }
 0x1b2   :  { %v172_v34 = vpop.xlane.xlu1 %171 }
 0x1b3   :  { %v179_v30 = vsub.f32 %v170_v26, %v177_v28  ;;  %v176_v31 = vmul.f32 %v174_v29, %v174_v29  ;;  %v204_v54 = vsub.f32 %v162_v21, %v174_v29 }
 0x1b5   :  { %v181_v32 = vmul.f32 0.007874016, %v179_v30  ;;  %v178_v33 = vmul.f32 128.0, %v176_v31 }
 0x1b7   :  { %v183_v35 = vmax.f32 %v181_v32, 0.0  ;;  %v180_v36 = vsub.f32 %v172_v34, %v178_v33 }
 0x1b9   :  { %282 = vrsqrt.f32 %v183_v35  ;;  %v182_v37 = vmul.f32 0.007874016, %v180_v36  ;;  %vm187_vm1 = vcmp.eq.f32.partialorder %v183_v35, inf  ;;  %v190_v41 = vand.u32 2147483648, %v183_v35 }
 0x1ba   :  { %vm189_vm2 = vcmp.eq.f32.partialorder %v183_v35, 0.0 }
 0x1bb   :  { %v184_v38 = vmax.f32 %v182_v37, 0.0 }
 0x1bd   :  { %284 = vrsqrt.f32 %v184_v38  ;;  %vm194_vm3 = vcmp.eq.f32.partialorder %v184_v38, inf  ;;  %v197_v47 = vand.u32 2147483648, %v184_v38  ;;  %vm196_vm4 = vcmp.eq.f32.partialorder %v184_v38, 0.0 }
 0x1c6   :  { %v283_v39 = vpop.eup %282 }
 0x1c7   :  { %v186_v40 = vmul.f32 %v283_v39, %v183_v35 }
 0x1c9   :  { %v188_v42 = vsel %vm187_vm1, %v183_v35, %v186_v40 }
 0x1ca   :  { %v191_v43 = vsel %vm189_vm2, %v190_v41, %v188_v42  ;;  %v285_v44 = vpop.eup %284 }
 0x1cb   :  { %v199_v45 = vadd.f32 1e-09, %v191_v43  ;;  %v193_v46 = vmul.f32 %v285_v44, %v184_v38 }
 0x1cd   :  { %286 = vrcp.f32 %v199_v45  ;;  %v195_v48 = vsel %vm194_vm3, %v184_v38, %v193_v46 }
 0x1ce   :  { %v198_v49 = vsel %vm196_vm4, %v197_v47, %v195_v48 }
 0x1cf   :  { %v200_v50 = vadd.f32 1e-09, %v198_v49 }
 0x1d1   :  { %288 = vrcp.f32 %v200_v50 }
 0x1da   :  { %v287_v52 = vpop.eup %286 }
 0x1db   :  { %v205_v53 = vmul.f32 %v287_v52, %v203_v51 }
 0x1dd   :  { %207 = vst [vmem:[#allocation7] sm:$0xff] %v205_v53 }
 0x1de   :  { %v289_v55 = vpop.eup %288 }
 0x1df   :  { %v206_v56 = vmul.f32 %v289_v55, %v204_v54 }
 0x1e1   :  { %208 = vst [vmem:[#allocation7 + $0x8] sm:$0xff] %v206_v56 }
 0x1e2   :  { %341 = shalt.err (!%p338_p0)
}
 0x1e3   :  { %220 = dma.vmem_to_hbm [thread:$0]  %s215_s26, 256, %s406_s3, [#allocation4], %s357_s15, %s357_s15, %s358_s16  }
 0x1e4   :  { %354 = dma.done.wait [#allocation4], 256  }
 0x1e5   :  { %355 = vsyncadd [#allocation4], 4294967040 }
 0x1e6   :  { %224 = vsyncpa [#allocation3], 1 }
 0x1e7   :  { %225 = vsyncpa [#allocation6], 1 }
 0x1e8   :  { %226 = vsyncpa [#allocation4], 1 }

</bundles_post_ra>
